<compile_context>
chip_gen: v7x
topology: tpu7x:2x2x1
jax: 0.10.0
libtpu: 0.0.40
codegen_flags: <defaults>
</compile_context>

<pallas_src>
from functools import partial

import jax
import jax.numpy as jnp
import numpy as np
from jax import lax
from jax.experimental import pallas as pl
from jax.experimental.pallas import tpu as pltpu


# ----------------------------- kernels --------------------------------------
def _softmax_rows(scores, out_ref, *, hard):
    """Row softmax (or hard one-hot) over the last (lane) axis of `scores`."""
    m = jnp.max(scores, axis=-1, keepdims=True)
    if hard:
        # One-hot at the FIRST argmax (matches torch's scatter on max index).
        # Ties are measure-zero with Gumbel noise; handled deterministically.
        c = scores.shape[-1]
        col = lax.broadcasted_iota(jnp.int32, scores.shape, 1)
        idx = jnp.min(jnp.where(scores == m, col, c), axis=-1, keepdims=True)
        out_ref[...] = (col == idx).astype(out_ref.dtype)
        # TODO(synk): straight-through gradient (y_hard - y_soft.detach() + y_soft)
        # is a backward-pass construct; the forward value equals y_hard.
    else:
        p = jnp.exp(scores - m)
        denom = jnp.sum(p, axis=-1, keepdims=True)
        out_ref[...] = (p * pl.reciprocal(denom, approx=False)).astype(out_ref.dtype)


def _softmax_kernel(x_ref, inv_tau_ref, o_ref):
    # mode == 'softmax': softmax(x * (1/tau))
    _softmax_rows(x_ref[...] * inv_tau_ref[0], o_ref, hard=False)


def _gumbel_kernel(x_ref, g_ref, inv_tau_ref, o_ref, *, hard):
    # gumbel_softmax: softmax((x + g) * (1/tau)), optionally hard one-hot.
    _softmax_rows((x_ref[...] + g_ref[...]) * inv_tau_ref[0], o_ref, hard=hard)


# ----------------------------- wrapper ---------------------------------------
def _sample_gumbel(key, shape):
    return jax.random.gumbel(key, shape, jnp.float32)


class Selection:
    """JAX/Pallas port of routing_bart_v2.Selection (forward only)."""

    def __init__(self, mode, tau=5.0):
        self.mode = mode
        self.tau = tau

    def set_gumbel_temperature(self, tau):
        self.tau = tau

    def __call__(self, x, temperature=None, *, key=None):
        orig_shape = x.shape
        c = orig_shape[-1]
        r = int(np.prod(orig_shape[:-1])) if len(orig_shape) > 1 else 1
        x2 = jnp.asarray(x, jnp.float32).reshape(r, c)

        vmem = pl.BlockSpec(memory_space=pltpu.MemorySpace.VMEM)
        smem = pl.BlockSpec(memory_space=pltpu.MemorySpace.SMEM)
        out_shape = jax.ShapeDtypeStruct((r, c), jnp.float32)

        if self.mode == "softmax":
            tau = self.tau if temperature is None else temperature
            inv_tau = jnp.asarray([1.0], jnp.float32) / jnp.float32(tau)
            out = pl.pallas_call(
                _softmax_kernel,
                out_shape=out_shape,
                in_specs=[vmem, smem],
                out_specs=vmem,
            )(x2, inv_tau)
        else:
            if key is None:
                raise ValueError("gumbel modes need a PRNG key")
            g = _sample_gumbel(key, orig_shape).reshape(r, c)
            inv_tau = jnp.asarray([1.0], jnp.float32) / jnp.float32(self.tau)
            hard = self.mode != "gumbel_softmax"
            out = pl.pallas_call(
                partial(_gumbel_kernel, hard=hard),
                out_shape=out_shape,
                in_specs=[vmem, vmem, smem],
                out_specs=vmem,
            )(x2, g, inv_tau)

        return out.reshape(orig_shape)


# ----------------------------- test ------------------------------------------
if __name__ == "__main__":
    key = jax.random.PRNGKey(0)
    k_x, k_g1, k_g2 = jax.random.split(key, 3)

    B, L, C = 2, 8, 32  # batch, seq, number of routing choices
    x = jax.random.normal(k_x, (B, L, C), jnp.float32)

    checks = []

    # 1) mode='softmax', explicit temperature override
    sel = Selection("softmax", tau=5.0)
    out = jax.block_until_ready(sel(x, temperature=2.0))
    checks.append((out, jax.nn.softmax(x / 2.0, axis=-1)))

    # 1b) mode='softmax', default tau
    out = jax.block_until_ready(sel(x))
    checks.append((out, jax.nn.softmax(x / 5.0, axis=-1)))

    # 2) mode='gumbel_softmax' (soft)
    sel = Selection("gumbel_softmax", tau=5.0)
    out = jax.block_until_ready(sel(x, key=k_g1))
    g1 = _sample_gumbel(k_g1, x.shape)
    checks.append((out, jax.nn.softmax((x + g1) / 5.0, axis=-1)))

    # 3) any other mode -> hard gumbel softmax (one-hot forward value)
    sel = Selection("gumbel_hard", tau=5.0)
    sel.set_gumbel_temperature(1.0)
    out = jax.block_until_ready(sel(x, key=k_g2))
    g2 = _sample_gumbel(k_g2, x.shape)
    scores = (x + g2) / 1.0
    hard_ref = jax.nn.one_hot(jnp.argmax(scores, axis=-1), C, dtype=jnp.float32)
    checks.append((out, hard_ref))

    for o, ref in checks:
        np.testing.assert_allclose(np.asarray(o), np.asarray(ref),
                                   rtol=1e-5, atol=1e-5)

    print("KERNEL_OK")
</pallas_src>

<mosaic_0001>
module attributes {stable_mosaic.version = 11 : i64} {
  func.func @_softmax_kernel(%arg0: memref<16x32xf32, #tpu.memory_space<vmem>>, %arg1: memref<1xf32, #tpu.memory_space<smem>>, %arg2: memref<16x32xf32, #tpu.memory_space<vmem>>) attributes {dimension_semantics = [], scalar_prefetch = 0 : i64, scratch_operands = 0 : i64, tpu.core_type = #tpu.core_type<tc>} {
    %c0 = arith.constant 0 : index
    %c0_0 = arith.constant 0 : index
    %0 = vector.load %arg0[%c0, %c0_0] : memref<16x32xf32, #tpu.memory_space<vmem>>, vector<16x32xf32>
    %c0_1 = arith.constant 0 : index
    %1 = memref.load %arg1[%c0_1] : memref<1xf32, #tpu.memory_space<smem>>
    %2 = vector.broadcast %1 : f32 to vector<16x32xf32>
    %3 = arith.mulf %0, %2 : vector<16x32xf32>
    %cst = arith.constant dense<0xFF800000> : vector<16xf32>
    %4 = vector.multi_reduction <maximumf>, %3, %cst [1] : vector<16x32xf32> to vector<16xf32>
    %5 = vector.shape_cast %4 : vector<16xf32> to vector<16x1xf32>
    %6 = vector.broadcast %5 : vector<16x1xf32> to vector<16x32xf32>
    %7 = arith.subf %3, %6 : vector<16x32xf32>
    %8 = math.exp %7 : vector<16x32xf32>
    %cst_2 = arith.constant dense<0.000000e+00> : vector<16xf32>
    %9 = vector.multi_reduction <add>, %8, %cst_2 [1] : vector<16x32xf32> to vector<16xf32>
    %10 = vector.shape_cast %9 : vector<16xf32> to vector<16x1xf32>
    %11 = tpu.reciprocal %10 : vector<16x1xf32> -> vector<16x1xf32>
    %12 = vector.broadcast %11 : vector<16x1xf32> to vector<16x32xf32>
    %13 = arith.mulf %8, %12 : vector<16x32xf32>
    %c0_3 = arith.constant 0 : index
    %c0_4 = arith.constant 0 : index
    %14 = vector.load %arg2[%c0_3, %c0_4] : memref<16x32xf32, #tpu.memory_space<vmem>>, vector<16x32xf32>
    tpu.vector_store %arg2[%c0_3, %c0_4], %13 {strides = array<i32>} : memref<16x32xf32, #tpu.memory_space<vmem>>, vector<16x32xf32>,
    return
  }
}

</mosaic_0001>

<bundles_post_ra>
// kernel: tpu_custom_call.1
= control target key start
LH: loop header
LB: loop body
LE: loop exit
PB: predicated region body
PF: predicated region fallthrough
CT: control target
= control target key end

     0   :  { %8 = vsyncpa [#allocation4], 0  ;;  %s193_s0 = inlined_call_operand.hbm [shape: f32[16,32], index: 0, kind: input, shape index: {}]   ;;  %s194_s1 = inlined_call_operand.<no memory space> [shape: f32[1], index: 1, kind: input, shape index: {}]   ;;  %s195_s2 = inlined_call_operand.hbm [shape: f32[16,32], index: 2, kind: output, shape index: {}]  }
   0x1   :  { %9 = vsyncpa [#allocation5], 0  ;;  %s135_s9 = smov [#allocation3]   ;;  %s87_s13 = scalar_lea.hbm %s193_s0, 256 }
   0x2   :  { %s15_s10 = sshll.u32 %s135_s9, 4  ;;  %p88_p0 = scmp.ne.s32.totalorder %s193_s0, %s87_s13  ;;  %s16_s10 = int_to_ptr.vmem [resolvable:$true] %s15_s10 }
   0x3   :  { %p91_p1 = scmp.lt.u32.totalorder %s87_s13, %s193_s0 }
   0x5   :  { %p93_p2 = pnand %p91_p1, %p88_p0 }
   0x7   :  { %96 = shalt.err (!%p93_p2)
}
   0x8   :  { %s97_s18 = scalar_lea.vmem %s16_s10, 256  ;;  %p102_p4 = scmp.lt.s32.totalorder %s16_s10, %s16_s10 }
   0x9   :  { %p98_p3 = scmp.ne.s32.totalorder %s16_s10, %s97_s18  ;;  %p103_p5 = scmp.lt.s32.totalorder %s97_s18, %s97_s18 }
   0xb   :  { %p104_p6 = por %p103_p5, %p102_p4 }
   0xd   :  { %p105_p7 = pnand %p104_p6, %p98_p3 }
   0xf   :  { %108 = shalt.err (!%p105_p7)
}
  0x10   :  { %s136_s19 = smov 128   ;;  %s137_s20 = smov 8  }
  0x11   :  { %21 = dma.hbm_to_vmem [thread:$0]  %s193_s0, 256, %s16_s10, [#allocation4], %s136_s19, %s136_s19, %s137_s20  }
  0x12   :  { %131 = dma.done.wait [#allocation4], 256  }
  0x13   :  { %132 = vsyncadd [#allocation4], 4294967040  ;;  %v30_v0 = vstv %s194_s1  ;;  %v27_v1 = vld [vmem:[#allocation3] sm:$0xff]  ;;  %vm33_vm0 = vcmask 261120   ;;  %v28_v2 = vld [vmem:[#allocation3 + $0x8] sm:$0xff]  ;;  %s138_s0 = smov [#allocation6]  }
  0x14   :  { %v31_v3 = vmul.f32 %v30_v0, %v27_v1  ;;  %v32_v4 = vmul.f32 %v30_v0, %v28_v2  ;;  %s63_s1 = sshll.u32 %s138_s0, 4  ;;  %s64_s1 = int_to_ptr.vmem [resolvable:$true] %s63_s1 }
  0x15   :  { %s109_s25 = scalar_lea.vmem %s64_s1, 256  ;;  %p114_p9 = scmp.lt.s32.totalorder %s64_s1, %s64_s1 }
  0x16   :  { %v34_v5 = vsel %vm33_vm0, %v31_v3, -inf  ;;  %v37_v6 = vsel %vm33_vm0, %v32_v4, -inf  ;;  %p110_p8 = scmp.ne.s32.totalorder %s64_s1, %s109_s25  ;;  %p115_p10 = scmp.lt.s32.totalorder %s109_s25, %s109_s25 }
  0x17   :  { %35 = vmax.xlane.f32.xlu0 %v34_v5 }
  0x18   :  { %p116_p11 = por %p115_p10, %p114_p9 }
  0x1a   :  { %p117_p12 = pnand %p116_p11, %p110_p8 }
  0x1b   :  { %38 = vmax.xlane.f32.xlu0 %v37_v6 }
  0xa4   :  { %v36_v7 = vpop.xlane.xlu0 %35 }
  0xa5   :  { %v40_v8 = vsub.f32 %v31_v3, %v36_v7 }
  0xa7   :  { %v42_v9 = vmul.f32 1.442695, %v40_v8 }
  0xa8   :  { %v39_v10 = vpop.xlane.xlu0 %38 }
  0xa9   :  { %79 = vpow2.f32 %v42_v9  ;;  %v41_v11 = vsub.f32 %v32_v4, %v39_v10 }
  0xab   :  { %v44_v12 = vmul.f32 1.442695, %v41_v11 }
  0xad   :  { %81 = vpow2.f32 %v44_v12 }
  0xb3   :  { %v80_v13 = vpop.eup %79 }
  0xb4   :  { %v46_v14 = vsel %vm33_vm0, %v80_v13, 0.0 }
  0xb5   :  { %47 = vadd.xlane.f32.xlu1 %v46_v14 }
  0xb7   :  { %v82_v15 = vpop.eup %81 }
  0xb8   :  { %v49_v16 = vsel %vm33_vm0, %v82_v15, 0.0 }
  0xb9   :  { %50 = vadd.xlane.f32.xlu1 %v49_v16 }
 0x142   :  { %v48_v17 = vpop.xlane.xlu1 %47 }
 0x143   :  { %83 = vrcp.f32 %v48_v17 }
 0x146   :  { %v51_v18 = vpop.xlane.xlu1 %50 }
 0x147   :  { %85 = vrcp.f32 %v51_v18 }
 0x14d   :  { %v84_v19 = vpop.eup %83 }
 0x14e   :  { %v54_v20 = vmul.f32 %v84_v19, %v80_v13 }
 0x150   :  { %56 = vst.msk [vmem:[#allocation6] sm:$0xff] %vm33_vm0, %v54_v20 }
 0x151   :  { %v86_v21 = vpop.eup %85 }
 0x152   :  { %v55_v22 = vmul.f32 %v86_v21, %v82_v15 }
 0x154   :  { %57 = vst.msk [vmem:[#allocation6 + $0x8] sm:$0xff] %vm33_vm0, %v55_v22 }
 0x155   :  { %120 = shalt.err (!%p117_p12)
}
 0x156   :  { %s121_s28 = scalar_lea.hbm %s195_s2, 256 }
 0x157   :  { %p122_p13 = scmp.ne.s32.totalorder %s195_s2, %s121_s28  ;;  %p125_p0 = scmp.lt.u32.totalorder %s121_s28, %s195_s2 }
 0x159   :  { %p127_p1 = pnand %p125_p0, %p122_p13 }
 0x15b   :  { %130 = shalt.err (!%p127_p1)
}
 0x15c   :  { %69 = dma.vmem_to_hbm [thread:$0]  %s64_s1, 256, %s195_s2, [#allocation5], %s136_s19, %s136_s19, %s137_s20  }
 0x15d   :  { %133 = dma.done.wait [#allocation5], 256  }
 0x15e   :  { %134 = vsyncadd [#allocation5], 4294967040 }
 0x15f   :  { %73 = vsyncpa [#allocation4], 1 }
 0x160   :  { %74 = vsyncpa [#allocation5], 1 }

</bundles_post_ra>
